<compile_context>
chip_gen: v5e
topology: v5e:2x2
jax: 0.10.0
libtpu: 0.0.40
codegen_flags: <defaults>
</compile_context>

<pallas_src>
import functools

import jax
import jax.numpy as jnp
from jax.experimental import pallas as pl
from jax.experimental.pallas import tpu as pltpu


def _unet_conv_block_kernel(x_ref, w1_ref, b1_ref, w2_ref, b2_ref, out_ref, *,
                            K, W, HW, Bt):
    """Per-grid-step shapes:
       x_ref:   (Bt, Cin, H*W)      images flattened width-W row-major (lane axis = spatial)
       w1_ref:  (Cout, K*K*Cin)     conv1 weights, lane-dense, tap-major columns (t = ky*K+kx)
       b1_ref:  (Cout, 1)           f32
       w2_ref:  (Cout, K*K*Cout)    conv2 weights, lane-dense, tap-major columns
       b2_ref:  (Cout, 1)           f32
       out_ref: (Bt, Cout, H*W)     f32, lane-dense (multiple of 128 at test size)
    """
    L = Bt * HW

    # Concatenate the batch tile along lanes -> (Cin, Bt*HW); each piece is a 128-multiple
    # wide so this is just vreg placement, no masked work.
    x_all = jnp.concatenate([x_ref[b] for b in range(Bt)], axis=-1)

    def im2col(img):
        # (C, L) -> (K*K*C, L); row block t holds the image rolled left by t's flat shift.
        cols = []
        for ky in range(K):
            for kx in range(K):
                s = ky * W + kx
                cols.append(img if s == 0 else pltpu.roll(img, (L - s) % L, axis=1))
        return jnp.concatenate(cols, axis=0)

    # ---- conv1: ONE MXU matmul (contraction K*K*Cin), f32 accumulate, bias + ReLU ----
    acc1 = jnp.dot(w1_ref[...], im2col(x_all), preferred_element_type=jnp.float32)
    mid = jnp.maximum(acc1 + b1_ref[...], 0.0).astype(w2_ref.dtype)      # (Cout, L)

    # ---- conv2: ONE MXU matmul (contraction K*K*Cout), f32 accumulate, bias ----
    acc2 = jnp.dot(w2_ref[...], im2col(mid), preferred_element_type=jnp.float32)
    out_all = acc2 + b2_ref[...]                                         # (Cout, L) f32

    # 128-aligned lane slices -> unmasked full-vreg stores.
    for b in range(Bt):
        out_ref[b] = out_all[:, b * HW:(b + 1) * HW].astype(out_ref.dtype)


def unet_conv_block(x_nchw, w1, b1, w2, b2, *, batch_tile=None,
                    compute_dtype=jnp.float32):
    """PyTorch-equivalent forward.

    x_nchw: (N, Cin, H, W) float32
    w1:     (Cout, Cin, K, K), b1: (Cout,)
    w2:     (Cout, Cout, K, K), b2: (Cout,)
    returns (N, Cout, H-2(K-1), W-2(K-1)) float32

    compute_dtype: matmul-operand dtype (jnp.bfloat16 recommended on v6e/v7x);
                   accumulation, bias and output stay float32.
    """
    N, Cin, H, W = x_nchw.shape
    Cout, Cin_w, K, K_w = w1.shape
    assert Cin_w == Cin and K_w == K
    H1, W1 = H - K + 1, W - K + 1
    H2, W2 = H1 - K + 1, W1 - K + 1
    assert H2 >= 1 and W2 >= 1, "spatial dims too small for two VALID convs"
    HW = H * W
    Bt = N if batch_tile is None else batch_tile
    assert N % Bt == 0, "batch_tile must divide N"

    # Free reshape (no transpose): NCHW -> (N, Cin, H*W), spatial on the lane axis.
    x_flat = x_nchw.reshape(N, Cin, HW).astype(compute_dtype)
    # Lane-dense weights: columns ordered (ky, kx, in_channel)  ->  (Cout, K*K*C).
    w1_d = jnp.transpose(w1, (0, 2, 3, 1)).reshape(Cout, K * K * Cin).astype(compute_dtype)
    w2_d = jnp.transpose(w2, (0, 2, 3, 1)).reshape(Cout, K * K * Cout).astype(compute_dtype)
    b1_c = b1.reshape(Cout, 1).astype(jnp.float32)
    b2_c = b2.reshape(Cout, 1).astype(jnp.float32)

    kernel = functools.partial(_unet_conv_block_kernel, K=K, W=W, HW=HW, Bt=Bt)

    flops = 2 * N * HW * K * K * (Cin * Cout + Cout * Cout)
    bytes_accessed = (x_flat.size * x_flat.dtype.itemsize
                      + w1_d.size * w1_d.dtype.itemsize
                      + w2_d.size * w2_d.dtype.itemsize
                      + 4 * (b1_c.size + b2_c.size + N * Cout * HW))

    out_flat = pl.pallas_call(
        kernel,
        out_shape=jax.ShapeDtypeStruct((N, Cout, HW), jnp.float32),
        grid=(N // Bt,),                                       # one batch tile per step
        in_specs=[
            pl.BlockSpec((Bt, Cin, HW), lambda g: (g, 0, 0)),  # pipelined over batch tiles
            pl.BlockSpec((Cout, K * K * Cin), lambda g: (0, 0)),   # weights stay resident
            pl.BlockSpec((Cout, 1), lambda g: (0, 0)),
            pl.BlockSpec((Cout, K * K * Cout), lambda g: (0, 0)),
            pl.BlockSpec((Cout, 1), lambda g: (0, 0)),
        ],
        out_specs=pl.BlockSpec((Bt, Cout, HW), lambda g: (g, 0, 0)),
        compiler_params=pltpu.CompilerParams(dimension_semantics=("parallel",)),
        cost_estimate=pl.CostEstimate(flops=flops, transcendentals=0,
                                      bytes_accessed=bytes_accessed),
    )(x_flat, w1_d, b1_c, w2_d, b2_c)

    # Undo the flat width-W layout: free reshape (already NCHW order), then drop the
    # invalid (K-1)*2 columns / rows per image.
    return out_flat.reshape(N, Cout, H, W)[:, :, :H2, :W2]


if __name__ == "__main__":
    N, Cin, Cout, H, W, K = 2, 4, 8, 16, 16, 3

    key = jax.random.PRNGKey(0)
    kx_, kw1, kb1, kw2, kb2 = jax.random.split(key, 5)

    x = jax.random.normal(kx_, (N, Cin, H, W), jnp.float32)

    # Deterministic init mimicking PyTorch Conv2d default (uniform +- 1/sqrt(fan_in)).
    bound1 = 1.0 / (Cin * K * K) ** 0.5
    bound2 = 1.0 / (Cout * K * K) ** 0.5
    w1 = jax.random.uniform(kw1, (Cout, Cin, K, K), jnp.float32, -bound1, bound1)
    b1 = jax.random.uniform(kb1, (Cout,), jnp.float32, -bound1, bound1)
    w2 = jax.random.uniform(kw2, (Cout, Cout, K, K), jnp.float32, -bound2, bound2)
    b2 = jax.random.uniform(kb2, (Cout,), jnp.float32, -bound2, bound2)

    # Pure-JAX reference (NCHW, VALID padding) to verify semantics.
    def conv_ref(inp, w, b):
        y = jax.lax.conv_general_dilated(
            inp, w, window_strides=(1, 1), padding="VALID",
            dimension_numbers=("NCHW", "OIHW", "NCHW"))
        return y + b.reshape(1, -1, 1, 1)

    ref = conv_ref(jax.nn.relu(conv_ref(x, w1, b1)), w2, b2)

    # f32-operand path (tight check).
    out = jax.block_until_ready(jax.jit(unet_conv_block)(x, w1, b1, w2, b2))
    assert out.shape == (N, Cout, H - 2 * (K - 1), W - 2 * (K - 1)), out.shape
    assert jnp.allclose(out, ref, atol=1e-3, rtol=1e-3), float(jnp.max(jnp.abs(out - ref)))

    # bf16-operand path (v6e/v7x MXU-native); f32 accumulate/output, looser tolerance.
    out_bf16 = jax.block_until_ready(
        jax.jit(functools.partial(unet_conv_block, compute_dtype=jnp.bfloat16))(
            x, w1, b1, w2, b2))
    assert jnp.allclose(out_bf16, ref, atol=5e-2, rtol=5e-2), \
        float(jnp.max(jnp.abs(out_bf16 - ref)))

    print("KERNEL_OK")
</pallas_src>

<mosaic_0001>
module attributes {stable_mosaic.version = 11 : i64} {
  func.func @_unet_conv_block_kernel(%arg0: i32, %arg1: memref<2x4x256xf32, #tpu.memory_space<vmem>>, %arg2: memref<8x36xf32, #tpu.memory_space<vmem>>, %arg3: memref<8x1xf32, #tpu.memory_space<vmem>>, %arg4: memref<8x72xf32, #tpu.memory_space<vmem>>, %arg5: memref<8x1xf32, #tpu.memory_space<vmem>>, %arg6: memref<2x8x256xf32, #tpu.memory_space<vmem>>) attributes {dimension_semantics = [#tpu.dimension_semantics<parallel>], iteration_bounds = array<i64: 1>, scalar_prefetch = 0 : i64, scratch_operands = 0 : i64, tpu.core_type = #tpu.core_type<tc>, window_params = [{transform_indices = @transform_0, window_bounds = array<i64: 2, 4, 256>}, {pipeline_mode = #tpu.pipeline_mode<synchronous>, transform_indices = @transform_1, window_bounds = array<i64: 8, 36>}, {pipeline_mode = #tpu.pipeline_mode<synchronous>, transform_indices = @transform_2, window_bounds = array<i64: 8, 1>}, {pipeline_mode = #tpu.pipeline_mode<synchronous>, transform_indices = @transform_3, window_bounds = array<i64: 8, 72>}, {pipeline_mode = #tpu.pipeline_mode<synchronous>, transform_indices = @transform_4, window_bounds = array<i64: 8, 1>}, {transform_indices = @transform_5, window_bounds = array<i64: 2, 8, 256>}]} {
    %c0 = arith.constant 0 : index
    %c0_0 = arith.constant 0 : index
    %c0_1 = arith.constant 0 : index
    %0 = vector.load %arg1[%c0, %c0_0, %c0_1] : memref<2x4x256xf32, #tpu.memory_space<vmem>>, vector<1x4x256xf32>
    %1 = vector.shape_cast %0 : vector<1x4x256xf32> to vector<4x256xf32>
    %c1 = arith.constant 1 : index
    %c0_2 = arith.constant 0 : index
    %c0_3 = arith.constant 0 : index
    %2 = vector.load %arg1[%c1, %c0_2, %c0_3] : memref<2x4x256xf32, #tpu.memory_space<vmem>>, vector<1x4x256xf32>
    %3 = vector.shape_cast %2 : vector<1x4x256xf32> to vector<4x256xf32>
    %4 = tpu.concatenate %1, %3 in 1 : vector<4x256xf32>, vector<4x256xf32> -> vector<4x512xf32>
    %c0_4 = arith.constant 0 : index
    %c0_5 = arith.constant 0 : index
    %5 = vector.load %arg2[%c0_4, %c0_5] : memref<8x36xf32, #tpu.memory_space<vmem>>, vector<8x36xf32>
    %c511_i32 = arith.constant 511 : i32
    %6 = tpu.dynamic_rotate %4 by %c511_i32 dim 1 : vector<4x512xf32>, i32 -> vector<4x512xf32>
    %c510_i32 = arith.constant 510 : i32
    %7 = tpu.dynamic_rotate %4 by %c510_i32 dim 1 : vector<4x512xf32>, i32 -> vector<4x512xf32>
    %c496_i32 = arith.constant 496 : i32
    %8 = tpu.dynamic_rotate %4 by %c496_i32 dim 1 : vector<4x512xf32>, i32 -> vector<4x512xf32>
    %c495_i32 = arith.constant 495 : i32
    %9 = tpu.dynamic_rotate %4 by %c495_i32 dim 1 : vector<4x512xf32>, i32 -> vector<4x512xf32>
    %c494_i32 = arith.constant 494 : i32
    %10 = tpu.dynamic_rotate %4 by %c494_i32 dim 1 : vector<4x512xf32>, i32 -> vector<4x512xf32>
    %c480_i32 = arith.constant 480 : i32
    %11 = tpu.dynamic_rotate %4 by %c480_i32 dim 1 : vector<4x512xf32>, i32 -> vector<4x512xf32>
    %c479_i32 = arith.constant 479 : i32
    %12 = tpu.dynamic_rotate %4 by %c479_i32 dim 1 : vector<4x512xf32>, i32 -> vector<4x512xf32>
    %c478_i32 = arith.constant 478 : i32
    %13 = tpu.dynamic_rotate %4 by %c478_i32 dim 1 : vector<4x512xf32>, i32 -> vector<4x512xf32>
    %14 = tpu.concatenate %4, %6, %7, %8, %9, %10, %11, %12, %13 in 0 : vector<4x512xf32>, vector<4x512xf32>, vector<4x512xf32>, vector<4x512xf32>, vector<4x512xf32>, vector<4x512xf32>, vector<4x512xf32>, vector<4x512xf32>, vector<4x512xf32> -> vector<36x512xf32>
    %cst = arith.constant dense<0.000000e+00> : vector<8x512xf32>
    %15 = tpu.matmul %5, %14, %cst {dimension_numbers = #tpu.dot_dimension_numbers<[1], [0], [0], [1], [0, 0, 1, 1], [], []>} : vector<8x36xf32>, vector<36x512xf32>, vector<8x512xf32> -> vector<8x512xf32>
    %c0_6 = arith.constant 0 : index
    %c0_7 = arith.constant 0 : index
    %16 = vector.load %arg3[%c0_6, %c0_7] : memref<8x1xf32, #tpu.memory_space<vmem>>, vector<8x1xf32>
    %17 = vector.broadcast %16 : vector<8x1xf32> to vector<8x512xf32>
    %18 = arith.addf %15, %17 : vector<8x512xf32>
    %cst_8 = arith.constant 0.000000e+00 : f32
    %19 = vector.broadcast %cst_8 : f32 to vector<8x512xf32>
    %20 = arith.maximumf %18, %19 : vector<8x512xf32>
    %c0_9 = arith.constant 0 : index
    %c0_10 = arith.constant 0 : index
    %21 = vector.load %arg4[%c0_9, %c0_10] : memref<8x72xf32, #tpu.memory_space<vmem>>, vector<8x72xf32>
    %c511_i32_11 = arith.constant 511 : i32
    %22 = tpu.dynamic_rotate %20 by %c511_i32_11 dim 1 : vector<8x512xf32>, i32 -> vector<8x512xf32>
    %c510_i32_12 = arith.constant 510 : i32
    %23 = tpu.dynamic_rotate %20 by %c510_i32_12 dim 1 : vector<8x512xf32>, i32 -> vector<8x512xf32>
    %c496_i32_13 = arith.constant 496 : i32
    %24 = tpu.dynamic_rotate %20 by %c496_i32_13 dim 1 : vector<8x512xf32>, i32 -> vector<8x512xf32>
    %c495_i32_14 = arith.constant 495 : i32
    %25 = tpu.dynamic_rotate %20 by %c495_i32_14 dim 1 : vector<8x512xf32>, i32 -> vector<8x512xf32>
    %c494_i32_15 = arith.constant 494 : i32
    %26 = tpu.dynamic_rotate %20 by %c494_i32_15 dim 1 : vector<8x512xf32>, i32 -> vector<8x512xf32>
    %c480_i32_16 = arith.constant 480 : i32
    %27 = tpu.dynamic_rotate %20 by %c480_i32_16 dim 1 : vector<8x512xf32>, i32 -> vector<8x512xf32>
    %c479_i32_17 = arith.constant 479 : i32
    %28 = tpu.dynamic_rotate %20 by %c479_i32_17 dim 1 : vector<8x512xf32>, i32 -> vector<8x512xf32>
    %c478_i32_18 = arith.constant 478 : i32
    %29 = tpu.dynamic_rotate %20 by %c478_i32_18 dim 1 : vector<8x512xf32>, i32 -> vector<8x512xf32>
    %30 = tpu.concatenate %20, %22, %23, %24, %25, %26, %27, %28, %29 in 0 : vector<8x512xf32>, vector<8x512xf32>, vector<8x512xf32>, vector<8x512xf32>, vector<8x512xf32>, vector<8x512xf32>, vector<8x512xf32>, vector<8x512xf32>, vector<8x512xf32> -> vector<72x512xf32>
    %cst_19 = arith.constant dense<0.000000e+00> : vector<8x512xf32>
    %31 = tpu.matmul %21, %30, %cst_19 {dimension_numbers = #tpu.dot_dimension_numbers<[1], [0], [0], [1], [0, 0, 1, 1], [], []>} : vector<8x72xf32>, vector<72x512xf32>, vector<8x512xf32> -> vector<8x512xf32>
    %c0_20 = arith.constant 0 : index
    %c0_21 = arith.constant 0 : index
    %32 = vector.load %arg5[%c0_20, %c0_21] : memref<8x1xf32, #tpu.memory_space<vmem>>, vector<8x1xf32>
    %33 = vector.broadcast %32 : vector<8x1xf32> to vector<8x512xf32>
    %34 = arith.addf %31, %33 : vector<8x512xf32>
    %35 = vector.extract_strided_slice %34 {offsets = [0, 0], sizes = [8, 256], strides = [1, 1]} : vector<8x512xf32> to vector<8x256xf32>
    %c0_22 = arith.constant 0 : index
    %c0_23 = arith.constant 0 : index
    %c0_24 = arith.constant 0 : index
    %36 = vector.load %arg6[%c0_22, %c0_23, %c0_24] : memref<2x8x256xf32, #tpu.memory_space<vmem>>, vector<1x8x256xf32>
    %37 = vector.shape_cast %36 : vector<1x8x256xf32> to vector<8x256xf32>
    %38 = vector.shape_cast %35 : vector<8x256xf32> to vector<1x8x256xf32>
    tpu.vector_store %arg6[%c0_22, %c0_23, %c0_24], %38 {strides = array<i32>} : memref<2x8x256xf32, #tpu.memory_space<vmem>>, vector<1x8x256xf32>,
    %39 = vector.extract_strided_slice %34 {offsets = [0, 256], sizes = [8, 256], strides = [1, 1]} : vector<8x512xf32> to vector<8x256xf32>
    %c1_25 = arith.constant 1 : index
    %c0_26 = arith.constant 0 : index
    %c0_27 = arith.constant 0 : index
    %40 = vector.load %arg6[%c1_25, %c0_26, %c0_27] : memref<2x8x256xf32, #tpu.memory_space<vmem>>, vector<1x8x256xf32>
    %41 = vector.shape_cast %40 : vector<1x8x256xf32> to vector<8x256xf32>
    %42 = vector.shape_cast %39 : vector<8x256xf32> to vector<1x8x256xf32>
    tpu.vector_store %arg6[%c1_25, %c0_26, %c0_27], %42 {strides = array<i32>} : memref<2x8x256xf32, #tpu.memory_space<vmem>>, vector<1x8x256xf32>,
    return
  }
  func.func @transform_0(%arg0: i32) -> (i32, i32, i32) {
    %c0_i32 = arith.constant 0 : i32
    %c0_i32_0 = arith.constant 0 : i32
    %c0_i32_1 = arith.constant 0 : i32
    return %arg0, %c0_i32, %c0_i32_0 : i32, i32, i32
  }
  func.func @transform_1(%arg0: i32) -> (i32, i32) {
    %c0_i32 = arith.constant 0 : i32
    %c0_i32_0 = arith.constant 0 : i32
    %c0_i32_1 = arith.constant 0 : i32
    return %c0_i32, %c0_i32_0 : i32, i32
  }
  func.func @transform_2(%arg0: i32) -> (i32, i32) {
    %c0_i32 = arith.constant 0 : i32
    %c0_i32_0 = arith.constant 0 : i32
    %c0_i32_1 = arith.constant 0 : i32
    return %c0_i32, %c0_i32_0 : i32, i32
  }
  func.func @transform_3(%arg0: i32) -> (i32, i32) {
    %c0_i32 = arith.constant 0 : i32
    %c0_i32_0 = arith.constant 0 : i32
    %c0_i32_1 = arith.constant 0 : i32
    return %c0_i32, %c0_i32_0 : i32, i32
  }
  func.func @transform_4(%arg0: i32) -> (i32, i32) {
    %c0_i32 = arith.constant 0 : i32
    %c0_i32_0 = arith.constant 0 : i32
    %c0_i32_1 = arith.constant 0 : i32
    return %c0_i32, %c0_i32_0 : i32, i32
  }
  func.func @transform_5(%arg0: i32) -> (i32, i32, i32) {
    %c0_i32 = arith.constant 0 : i32
    %c0_i32_0 = arith.constant 0 : i32
    %c0_i32_1 = arith.constant 0 : i32
    return %arg0, %c0_i32, %c0_i32_0 : i32, i32, i32
  }
}

</mosaic_0001>

<bundles_post_ra>
// kernel: unet_conv_block.1
= control target key start
LH: loop header
LB: loop body
LE: loop exit
PB: predicated region body
PF: predicated region fallthrough
CT: control target
= control target key end

     0   :  { %s655_s22 = smov 94   ;;  %s657_s23 = smov 110   ;;  %v44_v9 = vlaneseq  ;;  %vm190_vm1 = vcmask 1043456   ;;  %v663_v53 = vmov 0   ;;  %vm213_vm9 = vcmask 293888   ;;  %s1016_s0 = inlined_call_operand.vmem [shape: f32[2,4,256], index: 0, kind: input, shape index: {}]   ;;  %s1017_s2 = inlined_call_operand.vmem [shape: f32[8,1], index: 2, kind: input, shape index: {}]   ;;  %s1018_s1 = inlined_call_operand.vmem [shape: f32[8,36], index: 1, kind: input, shape index: {}]   ;;  %s1019_s4 = inlined_call_operand.vmem [shape: f32[8,1], index: 4, kind: input, shape index: {}]   ;;  %s1020_s3 = inlined_call_operand.vmem [shape: f32[8,72], index: 3, kind: input, shape index: {}]   ;;  %s1021_s5 = inlined_call_operand.vmem [shape: f32[2,8,256], index: 5, kind: output, shape index: {}]  }
   0x1   :  { %v20_v0 = vld [vmem:[%s1016_s0] sm:$0xff]  ;;  %v509_v1 = vld [vmem:[%s1016_s0 + $0x8] sm:$0xff]  ;;  %s656_s0 = smov 95   ;;  %s658_s24 = smov 96   ;;  %593 = vset.pattern.permute.xlu2 %v663_v53  ;;  %654 = vset.pattern.permute.xlu0 %v663_v53  ;;  %vm416_vm10 = vcmask 588800  }
   0x2   :  { %24 = vst [vmem:[#allocation1] ss:$2 sm:$0xff] %v20_v0  ;;  %s659_s25 = smov 112   ;;  %s660_s26 = smov 111   ;;  %v742_v11 = vand.u32 127, %v44_v9  ;;  %v207_v52 = vld [vmem:[%s1017_s2] sm:$0xff] }
   0x3   :  { %s661_s27 = smov 127   ;;  %s662_s28 = smov 126  }
   0x4   :  { %vm137_vm0 = vcmp.lt.s32.totalorder %v742_v11, 94  ;;  %vm111_vm2 = vcmp.lt.s32.totalorder %v742_v11, 96  ;;  %vm124_vm3 = vcmp.lt.s32.totalorder %v742_v11, 95  ;;  %vm98_vm4 = vcmp.lt.s32.totalorder %v742_v11, 110 }
   0x5   :  { %vm72_vm5 = vcmp.lt.s32.totalorder %v742_v11, 112  ;;  %vm85_vm6 = vcmp.lt.s32.totalorder %v742_v11, 111  ;;  %vm46_vm7 = vcmp.lt.s32.totalorder %v742_v11, 127  ;;  %vm59_vm8 = vcmp.lt.s32.totalorder %v742_v11, 126 }
   0x9   :  { %v700_v2 = vld.sshfl [vmem:[#allocation1] sm:$0xff pattern:$0x75316420]  ;;  %v702_v3 = vld.sshfl [vmem:[#allocation1 + $0x8] sm:$0xff pattern:$0x75316420] }
   0xa   :  { %129 = vrot.lane.b32.xlu1 %v700_v2, %s655_s22  ;;  %30 = vst [vmem:[#allocation1] ss:$2 sm:$0xff] %v509_v1 }
  0x11   :  { %v706_v4 = vld.sshfl [vmem:[#allocation1 + $0x8] sm:$0xff pattern:$0x75316420]  ;;  %v708_v5 = vld.sshfl [vmem:[#allocation1] sm:$0xff pattern:$0x75316420] }
  0x12   :  { %135 = vrot.lane.b32.xlu2 %v706_v4, %s655_s22  ;;  %v533_v6 = vpack.i.bf16 %v708_v5, %v700_v2  ;;  %133 = vrot.lane.b32.xlu1 %v708_v5, %s655_s22  ;;  %v538_v7 = vpack.i.bf16 %v702_v3, %v706_v4 }
  0x14   :  { %534 = vrot.lane.b32.xlu0 %v533_v6, %s656_s0 }
  0x1a   :  { %544 = vrot.lane.b32.xlu2 %v533_v6, %s657_s23  ;;  %554 = vrot.lane.b32.xlu1 %v533_v6, %s658_s24 }
  0x1c   :  { %539 = vrot.lane.b32.xlu0 %v538_v7, %s656_s0 }
  0x22   :  { %559 = vrot.lane.b32.xlu2 %v538_v7, %s658_s24  ;;  %569 = vrot.lane.b32.xlu1 %v538_v7, %s659_s25 }
  0x24   :  { %549 = vrot.lane.b32.xlu0 %v538_v7, %s657_s23 }
  0x2a   :  { %574 = vrot.lane.b32.xlu2 %v533_v6, %s660_s26  ;;  %584 = vrot.lane.b32.xlu1 %v533_v6, %s661_s27 }
  0x2c   :  { %564 = vrot.lane.b32.xlu0 %v533_v6, %s659_s25 }
  0x32   :  { %42 = vrot.lane.b32.xlu2 %v706_v4, %s661_s27  ;;  %57 = vrot.lane.b32.xlu1 %v706_v4, %s662_s28 }
  0x34   :  { %579 = vrot.lane.b32.xlu0 %v538_v7, %s660_s26 }
  0x3a   :  { %131 = vrot.lane.b32.xlu2 %v702_v3, %s655_s22  ;;  %53 = vrot.lane.b32.xlu1 %v702_v3, %s662_s28 }
  0x3c   :  { %589 = vrot.lane.b32.xlu0 %v533_v6, %s662_s28 }
  0x42   :  { %210 = vperm.xlu2 %593, %v207_v52   ;;  %v35_v52 = vld [vmem:[%s1018_s1] sm:$0xff] }
  0x44   :  { %38 = vrot.lane.b32.xlu0 %v702_v3, %s661_s27 }
  0x6c   :  { %v136_v8 = vpop.permute.xlu2 %135 }
  0x74   :  { %v740_v10 = vpop.permute.xlu2 %544 }
  0x75   :  { %v547_v57 = vunpack.i.h.bf16 %v740_v10  ;;  %v546_v58 = vunpack.i.l.bf16 %v740_v10 }
  0x7c   :  { %v560_v12 = vpop.permute.xlu2 %559  ;;  %v130_v13 = vpop.permute.xlu1 %129 }
  0x7d   :  { %v141_v14 = vsel %vm137_vm0, %v136_v8, %v130_v13  ;;  %v561_v19 = vunpack.i.l.bf16 %v560_v12  ;;  %v562_v29 = vunpack.i.h.bf16 %v560_v12 }
  0x7e   :  { %516 = vmatpush.msk.msra.mxu3 %vm190_vm1, %v141_v14 }
  0x84   :  { %v748_v15 = vpop.permute.xlu2 %574  ;;  %v134_v16 = vpop.permute.xlu1 %133 }
  0x85   :  { %v138_v17 = vsel %vm137_vm0, %v134_v16, %v136_v8  ;;  %v577_v0 = vunpack.i.h.bf16 %v748_v15  ;;  %v576_v1 = vunpack.i.l.bf16 %v748_v15 }
  0x86   :  { %v535_v18 = vpop.permute.xlu0 %534  ;;  %514 = vmatpush.msk.msra.mxu2 %vm190_vm1, %v138_v17 }
  0x87   :  { %v537_v25 = vunpack.i.h.bf16 %v535_v18  ;;  %v536_v26 = vunpack.i.l.bf16 %v535_v18 }
  0x8c   :  { %v753_v20 = vpop.permute.xlu2 %42  ;;  %v555_v21 = vpop.permute.xlu1 %554 }
  0x8d   :  { %v557_v22 = vunpack.i.h.bf16 %v555_v21  ;;  %v556_v23 = vunpack.i.l.bf16 %v555_v21 }
  0x8e   :  { %v540_v24 = vpop.permute.xlu0 %539 }
  0x8f   :  { %v542_v27 = vunpack.i.h.bf16 %v540_v24  ;;  %v541_v28 = vunpack.i.l.bf16 %v540_v24  ;;  %v112_v30 = vsel %vm111_vm2, %v557_v22, %v561_v19  ;;  %v115_v31 = vsel %vm111_vm2, %v561_v19, %v556_v23 }
  0x90   :  { %v114_v44 = vsel %vm111_vm2, %v556_v23, %v562_v29  ;;  %v113_v45 = vsel %vm111_vm2, %v562_v29, %v557_v22 }
  0x91   :  { %v125_v32 = vsel %vm124_vm3, %v537_v25, %v541_v28  ;;  %v128_v33 = vsel %vm124_vm3, %v541_v28, %v536_v26  ;;  %v127_v34 = vsel %vm124_vm3, %v536_v26, %v542_v27  ;;  %v126_v35 = vsel %vm124_vm3, %v542_v27, %v537_v25 }
  0x92   :  { %v184_v36 = vrot.slane %v125_v32, 4  ;;  %v185_v37 = vrot.slane %v128_v33, 4  ;;  %v182_v38 = vrot.slane %v127_v34, 4  ;;  %v183_v39 = vrot.slane %v126_v35, 4 }
  0x94   :  { %v132_v40 = vpop.permute.xlu2 %131  ;;  %v205_v41 = vsel %vm190_vm1, %v112_v30, %v184_v36  ;;  %v206_v42 = vsel %vm190_vm1, %v115_v31, %v185_v37  ;;  %v771_v43 = vpop.permute.xlu1 %569  ;;  %v203_v49 = vsel %vm190_vm1, %v114_v44, %v182_v38  ;;  %v204_v50 = vsel %vm190_vm1, %v113_v45, %v183_v39 }
  0x95   :  { %281 = vmatpush.msra.mxu2 %v205_v41  ;;  %301 = vmatpush.msra.mxu3 %v206_v42  ;;  %v140_v46 = vsel %vm137_vm0, %v130_v13, %v132_v40  ;;  %v139_v47 = vsel %vm137_vm0, %v132_v40, %v134_v16  ;;  %v572_v6 = vunpack.i.h.bf16 %v771_v43  ;;  %v571_v7 = vunpack.i.l.bf16 %v771_v43 }
  0x96   :  { %510 = vmatpush.msk.msra.mxu0 %vm190_vm1, %v140_v46  ;;  %512 = vmatpush.msk.msra.mxu1 %vm190_vm1, %v139_v47  ;;  %v550_v48 = vpop.permute.xlu0 %549 }
  0x97   :  { %v552_v55 = vunpack.i.h.bf16 %v550_v48  ;;  %v551_v56 = vunpack.i.l.bf16 %v550_v48 }
  0x98   :  { %241 = vmatpush.msra.mxu0 %v203_v49  ;;  %261 = vmatpush.msra.mxu1 %v204_v50 }
  0x99   :  { %v101_v59 = vsel %vm98_vm4, %v546_v58, %v552_v55  ;;  %v100_v60 = vsel %vm98_vm4, %v552_v55, %v547_v57  ;;  %v99_v62 = vsel %vm98_vm4, %v547_v57, %v551_v56  ;;  %v102_v63 = vsel %vm98_vm4, %v551_v56, %v546_v58 }
  0x9a   :  { %v170_v9 = vrot.slane %v101_v59, 4  ;;  %v171_v10 = vrot.slane %v100_v60, 4  ;;  %v172_v14 = vrot.slane %v99_v62, 4  ;;  %v173_v16 = vrot.slane %v102_v63, 4 }
  0x9c   :  { %v785_v51 = vpop.permute.xlu1 %584  ;;  %v211_v60 = vpop.permute.xlu2 %210 }
  0x9d   :  { %v587_v19 = vunpack.i.h.bf16 %v785_v51  ;;  %v586_v15 = vunpack.i.l.bf16 %v785_v51 }
  0x9e   :  { %v565_v54 = vpop.permute.xlu0 %564 }
  0x9f   :  { %v567_v17 = vunpack.i.h.bf16 %v565_v54  ;;  %v566_v18 = vunpack.i.l.bf16 %v565_v54  ;;  %v47_v29 = vsel %vm46_vm7, %v587_v19, %v753_v20  ;;  %v50_v30 = vsel %vm46_vm7, %v753_v20, %v586_v15 }
  0xa0   :  { %v148_v39 = vrot.slane %v47_v29, 4  ;;  %v149_v20 = vrot.slane %v50_v30, 4 }
  0xa1   :  { %v75_v31 = vsel %vm72_vm5, %v566_v18, %v572_v6  ;;  %v74_v32 = vsel %vm72_vm5, %v572_v6, %v567_v17  ;;  %v73_v33 = vsel %vm72_vm5, %v567_v17, %v571_v7  ;;  %v76_v34 = vsel %vm72_vm5, %v571_v7, %v566_v18 }
  0xa2   :  { %v158_v40 = vrot.slane %v75_v31, 4  ;;  %v159_v41 = vrot.slane %v74_v32, 4  ;;  %v160_v42 = vrot.slane %v73_v33, 4  ;;  %v161_v43 = vrot.slane %v76_v34, 4 }
  0xa3   :  { %v193_v53 = vsel %vm190_vm1, %v708_v5, %v148_v39  ;;  %v194_v54 = vsel %vm190_vm1, %v706_v4, %v149_v20 }
  0xa4   :  { %v58_v61 = vpop.permute.xlu1 %57 }
  0xa6   :  { %v580_v8 = vpop.permute.xlu0 %579 }
  0xa7   :  { %v582_v12 = vunpack.i.h.bf16 %v580_v8  ;;  %v581_v13 = vunpack.i.l.bf16 %v580_v8 }
  0xa9   :  { %v88_v21 = vsel %vm85_vm6, %v576_v1, %v582_v12  ;;  %v87_v22 = vsel %vm85_vm6, %v582_v12, %v577_v0  ;;  %v86_v23 = vsel %vm85_vm6, %v577_v0, %v581_v13  ;;  %v89_v24 = vsel %vm85_vm6, %v581_v13, %v576_v1 }
  0xaa   :  { %v199_v25 = vsel %vm190_vm1, %v88_v21, %v170_v9  ;;  %v200_v26 = vsel %vm190_vm1, %v87_v22, %v171_v10  ;;  %v201_v27 = vsel %vm190_vm1, %v86_v23, %v172_v14  ;;  %v202_v28 = vsel %vm190_vm1, %v89_v24, %v173_v16  ;;  %v410_v14 = vld [vmem:[%s1019_s4] sm:$0xff] }
  0xab   :  { %242 = vmatpush.msra.mxu0 %v199_v25  ;;  %262 = vmatpush.msra.mxu1 %v200_v26 }
  0xac   :  { %282 = vmatpush.msra.mxu2 %v201_v27  ;;  %302 = vmatpush.msra.mxu3 %v202_v28  ;;  %v54_v36 = vpop.permute.xlu1 %53 }
  0xae   :  { %v590_v35 = vpop.permute.xlu0 %589 }
  0xaf   :  { %v592_v37 = vunpack.i.h.bf16 %v590_v35  ;;  %v591_v38 = vunpack.i.l.bf16 %v590_v35 }
  0xb1   :  { %v61_v44 = vsel %vm59_vm8, %v54_v36, %v592_v37  ;;  %v62_v45 = vsel %vm59_vm8, %v591_v38, %v54_v36  ;;  %v60_v46 = vsel %vm59_vm8, %v592_v37, %v58_v61  ;;  %v63_v47 = vsel %vm59_vm8, %v58_v61, %v591_v38 }
  0xb2   :  { %v195_v48 = vsel %vm190_vm1, %v62_v45, %v158_v40  ;;  %v196_v49 = vsel %vm190_vm1, %v61_v44, %v159_v41  ;;  %v197_v50 = vsel %vm190_vm1, %v60_v46, %v160_v42  ;;  %v198_v51 = vsel %vm190_vm1, %v63_v47, %v161_v43 }
  0xb3   :  { %243 = vmatpush.msra.mxu0 %v195_v48  ;;  %263 = vmatpush.msra.mxu1 %v196_v49 }
  0xb4   :  { %283 = vmatpush.msra.mxu2 %v197_v50  ;;  %303 = vmatpush.msra.mxu3 %v198_v51 }
  0xb6   :  { %284 = vmatpush.msra.mxu2 %v193_v53  ;;  %304 = vmatpush.msra.mxu3 %v194_v54  ;;  %v39_v55 = vpop.permute.xlu0 %38 }
  0xb7   :  { %v48_v56 = vsel %vm46_vm7, %v39_v55, %v587_v19  ;;  %v49_v57 = vsel %vm46_vm7, %v586_v15, %v39_v55  ;;  %515 = vmatmul.msk.f32.vlgmr.msra.gmra.mxu2 %vm213_vm9, %v35_v52  ;;  %517 = vmatmul.msk.f32.vlgmr.msra.gmra.mxu3 %vm213_vm9, %v35_v52 }
  0xb8   :  { %v146_v58 = vrot.slane %v49_v57, 4  ;;  %v147_v59 = vrot.slane %v48_v56, 4 }
  0xba   :  { %v191_v5 = vsel %vm190_vm1, %v700_v2, %v146_v58  ;;  %v192_v4 = vsel %vm190_vm1, %v702_v3, %v147_v59 }
  0xbb   :  { %244 = vmatpush.msra.mxu0 %v191_v5  ;;  %264 = vmatpush.msra.mxu1 %v192_v4 }
  0xbc   :  { %511 = vmatmul.msk.f32.vlgmr.msra.gmra.mxu0 %vm213_vm9, %v35_v52  ;;  %513 = vmatmul.msk.f32.vlgmr.msra.gmra.mxu1 %vm213_vm9, %v35_v52 }
 0x139   :  { %v246_v61 = vpop.f32.mrf.mxu0  ;;  %v266_v62 = vpop.f32.mrf.mxu1 }
 0x13a   :  { %v868_v63 = vadd.f32 %v246_v61, %v211_v60  ;;  %v267_v0 = vadd.f32 %v266_v62, %v211_v60  ;;  %v286_v1 = vpop.f32.mrf.mxu2  ;;  %v306_v6 = vpop.f32.mrf.mxu3 }
 0x13b   :  { %v870_v7 = vadd.f32 %v286_v1, %v211_v60  ;;  %v307_v3 = vadd.f32 %v306_v6, %v211_v60 }
 0x13c   :  { %v309_v2 = vmax.f32 %v868_v63, 0.0  ;;  %v873_v8 = vmax.f32 %v267_v0, 0.0 }
 0x13d   :  { %v311_v9 = vmax.f32 %v870_v7, 0.0  ;;  %v882_v12 = vmax.f32 %v307_v3, 0.0 }
 0x13e   :  { %352 = vrot.lane.b32.xlu1 %v873_v8, %s660_s26 }
 0x13f   :  { %v604_v10 = vpack.i.bf16 %v311_v9, %v309_v2  ;;  %v599_v13 = vpack.i.bf16 %v873_v8, %v882_v12 }
 0x141   :  { %605 = vrot.lane.b32.xlu2 %v604_v10, %s656_s0  ;;  %595 = vrot.lane.b32.xlu0 %v604_v10, %s655_s22 }
 0x146   :  { %600 = vrot.lane.b32.xlu1 %v599_v13, %s655_s22 }
 0x149   :  { %620 = vrot.lane.b32.xlu2 %v599_v13, %s658_s24  ;;  %610 = vrot.lane.b32.xlu0 %v599_v13, %s656_s0 }
 0x14e   :  { %615 = vrot.lane.b32.xlu1 %v604_v10, %s658_s24 }
 0x151   :  { %635 = vrot.lane.b32.xlu2 %v604_v10, %s660_s26  ;;  %625 = vrot.lane.b32.xlu0 %v604_v10, %s657_s23 }
 0x156   :  { %630 = vrot.lane.b32.xlu1 %v599_v13, %s657_s23 }
 0x159   :  { %344 = vrot.lane.b32.xlu2 %v882_v12, %s659_s25  ;;  %356 = vrot.lane.b32.xlu0 %v882_v12, %s660_s26 }
 0x15e   :  { %640 = vrot.lane.b32.xlu1 %v604_v10, %s659_s25 }
 0x161   :  { %650 = vrot.lane.b32.xlu2 %v604_v10, %s661_s27  ;;  %645 = vrot.lane.b32.xlu0 %v604_v10, %s662_s28 }
 0x166   :  { %332 = vrot.lane.b32.xlu1 %v882_v12, %s662_s28 }
 0x169   :  { %340 = vrot.lane.b32.xlu2 %v873_v8, %s659_s25  ;;  %320 = vrot.lane.b32.xlu0 %v882_v12, %s661_s27 }
 0x16e   :  { %316 = vrot.lane.b32.xlu1 %v873_v8, %s661_s27 }
 0x171   :  { %413 = vperm.xlu2 %593, %v410_v14   ;;  %328 = vrot.lane.b32.xlu0 %v873_v8, %s662_s28 }
 0x19b   :  { %v606_v16 = vpop.permute.xlu2 %605 }
 0x19c   :  { %v608_v31 = vunpack.i.h.bf16 %v606_v16  ;;  %v607_v32 = vunpack.i.l.bf16 %v606_v16 }
 0x1a3   :  { %v621_v17 = vpop.permute.xlu2 %620 }
 0x1a4   :  { %v623_v40 = vunpack.i.h.bf16 %v621_v17  ;;  %v622_v41 = vunpack.i.l.bf16 %v621_v17 }
 0x1ab   :  { %v917_v15 = vpop.permute.xlu2 %635 }
 0x1ac   :  { %v638_v55 = vunpack.i.h.bf16 %v917_v15  ;;  %v637_v56 = vunpack.i.l.bf16 %v917_v15 }
 0x1b0   :  { %v915_v18 = vpop.permute.xlu1 %352 }
 0x1b1   :  { %v360_v60 = vsel %vm85_vm6, %v637_v56, %v915_v18  ;;  %v359_v61 = vsel %vm85_vm6, %v915_v18, %v638_v55 }
 0x1b3   :  { %v596_v19 = vpop.permute.xlu0 %595  ;;  %v345_v35 = vpop.permute.xlu2 %344 }
 0x1b4   :  { %v598_v22 = vunpack.i.h.bf16 %v596_v19  ;;  %v597_v23 = vunpack.i.l.bf16 %v596_v19 }
 0x1b8   :  { %v601_v21 = vpop.permute.xlu1 %600 }
 0x1b9   :  { %v603_v24 = vunpack.i.h.bf16 %v601_v21  ;;  %v602_v25 = vunpack.i.l.bf16 %v601_v21 }
 0x1bb   :  { %v611_v26 = vpop.permute.xlu0 %610  ;;  %v408_v27 = vsel %vm137_vm0, %v597_v23, %v603_v24  ;;  %v407_v28 = vsel %vm137_vm0, %v603_v24, %v598_v22  ;;  %v406_v29 = vsel %vm137_vm0, %v598_v22, %v602_v25  ;;  %v409_v30 = vsel %vm137_vm0, %v602_v25, %v597_v23  ;;  %v943_v49 = vpop.permute.xlu2 %650 }
 0x1bc   :  { %v613_v33 = vunpack.i.h.bf16 %v611_v26  ;;  %v612_v34 = vunpack.i.l.bf16 %v611_v26  ;;  %427 = vmatpush.msrb.mxu0 %v408_v27  ;;  %447 = vmatpush.msrb.mxu1 %v407_v28  ;;  %v653_v24 = vunpack.i.h.bf16 %v943_v49  ;;  %v652_v25 = vunpack.i.l.bf16 %v943_v49 }
 0x1bd   :  { %467 = vmatpush.msrb.mxu2 %v406_v29  ;;  %487 = vmatpush.msrb.mxu3 %v409_v30  ;;  %v313_v29 = vld [vmem:[%s1020_s3] sm:$0xff] }
 0x1be   :  { %v396_v36 = vsel %vm124_vm3, %v607_v32, %v613_v33  ;;  %v395_v37 = vsel %vm124_vm3, %v613_v33, %v608_v31  ;;  %v394_v38 = vsel %vm124_vm3, %v608_v31, %v612_v34  ;;  %v397_v39 = vsel %vm124_vm3, %v612_v34, %v607_v32 }
 0x1bf   :  { %428 = vmatpush.msrb.mxu0 %v396_v36  ;;  %448 = vmatpush.msrb.mxu1 %v395_v37 }
 0x1c0   :  { %468 = vmatpush.msrb.mxu2 %v394_v38  ;;  %488 = vmatpush.msrb.mxu3 %v397_v39  ;;  %v616_v20 = vpop.permute.xlu1 %615 }
 0x1c1   :  { %v618_v42 = vunpack.i.h.bf16 %v616_v20  ;;  %v617_v43 = vunpack.i.l.bf16 %v616_v20 }
 0x1c3   :  { %v626_v44 = vpop.permute.xlu0 %625  ;;  %v384_v45 = vsel %vm111_vm2, %v617_v43, %v623_v40  ;;  %v383_v46 = vsel %vm111_vm2, %v623_v40, %v618_v42  ;;  %v382_v47 = vsel %vm111_vm2, %v618_v42, %v622_v41  ;;  %v385_v48 = vsel %vm111_vm2, %v622_v41, %v617_v43  ;;  %v341_v10 = vpop.permute.xlu2 %340 }
 0x1c4   :  { %429 = vmatpush.msrb.mxu0 %v384_v45  ;;  %449 = vmatpush.msrb.mxu1 %v383_v46  ;;  %v628_v51 = vunpack.i.h.bf16 %v626_v44  ;;  %v627_v52 = vunpack.i.l.bf16 %v626_v44 }
 0x1c5   :  { %469 = vmatpush.msrb.mxu2 %v382_v47  ;;  %489 = vmatpush.msrb.mxu3 %v385_v48 }
 0x1c8   :  { %v631_v50 = vpop.permute.xlu1 %630 }
 0x1c9   :  { %v633_v53 = vunpack.i.h.bf16 %v631_v50  ;;  %v632_v54 = vunpack.i.l.bf16 %v631_v50 }
 0x1cb   :  { %v357_v57 = vpop.permute.xlu0 %356  ;;  %v372_v58 = vsel %vm98_vm4, %v627_v52, %v633_v53  ;;  %v371_v59 = vsel %vm98_vm4, %v633_v53, %v628_v51  ;;  %v370_v5 = vsel %vm98_vm4, %v628_v51, %v632_v54  ;;  %v373_v4 = vsel %vm98_vm4, %v632_v54, %v627_v52 }
 0x1cc   :  { %430 = vmatpush.msrb.mxu0 %v372_v58  ;;  %450 = vmatpush.msrb.mxu1 %v371_v59  ;;  %v358_v62 = vsel %vm85_vm6, %v638_v55, %v357_v57  ;;  %v361_v0 = vsel %vm85_vm6, %v357_v57, %v637_v56 }
 0x1cd   :  { %470 = vmatpush.msrb.mxu2 %v370_v5  ;;  %490 = vmatpush.msrb.mxu3 %v373_v4 }
 0x1ce   :  { %431 = vmatpush.msrb.mxu0 %v360_v60  ;;  %451 = vmatpush.msrb.mxu1 %v359_v61 }
 0x1cf   :  { %471 = vmatpush.msrb.mxu2 %v358_v62  ;;  %491 = vmatpush.msrb.mxu3 %v361_v0 }
 0x1d0   :  { %v641_v1 = vpop.permute.xlu1 %640 }
 0x1d1   :  { %v643_v6 = vunpack.i.h.bf16 %v641_v1  ;;  %v642_v3 = vunpack.i.l.bf16 %v641_v1 }
 0x1d3   :  { %v646_v13 = vpop.permute.xlu0 %645  ;;  %v348_v14 = vsel %vm72_vm5, %v642_v3, %v341_v10  ;;  %v347_v16 = vsel %vm72_vm5, %v341_v10, %v643_v6  ;;  %v346_v17 = vsel %vm72_vm5, %v643_v6, %v345_v35  ;;  %v349_v18 = vsel %vm72_vm5, %v345_v35, %v642_v3 }
 0x1d4   :  { %432 = vmatpush.msrb.mxu0 %v348_v14  ;;  %452 = vmatpush.msrb.mxu1 %v347_v16  ;;  %v648_v19 = vunpack.i.h.bf16 %v646_v13  ;;  %v647_v15 = vunpack.i.l.bf16 %v646_v13 }
 0x1d5   :  { %472 = vmatpush.msrb.mxu2 %v346_v17  ;;  %492 = vmatpush.msrb.mxu3 %v349_v18 }
 0x1d8   :  { %v333_v21 = vpop.permute.xlu1 %332 }
 0x1d9   :  { %v334_v22 = vsel %vm59_vm8, %v648_v19, %v333_v21  ;;  %v337_v23 = vsel %vm59_vm8, %v333_v21, %v647_v15 }
 0x1da   :  { %473 = vmatpush.msrb.mxu2 %v334_v22  ;;  %493 = vmatpush.msrb.mxu3 %v337_v23 }
 0x1db   :  { %v321_v26 = vpop.permute.xlu0 %320 }
 0x1dc   :  { %v322_v27 = vsel %vm46_vm7, %v653_v24, %v321_v26  ;;  %v325_v28 = vsel %vm46_vm7, %v321_v26, %v652_v25 }
 0x1dd   :  { %474 = vmatpush.msrb.mxu2 %v322_v27  ;;  %494 = vmatpush.msrb.mxu3 %v325_v28 }
 0x1df   :  { %475 = vmatpush.msrb.mxu2 %v311_v9  ;;  %495 = vmatpush.msrb.mxu3 %v882_v12  ;;  %v414_v12 = vpop.permute.xlu2 %413 }
 0x1e0   :  { %520 = vmatmul.msk.f32.vlgmr.msrb.gmra.mxu2 %vm416_vm10, %v313_v29  ;;  %521 = vmatmul.msk.f32.vlgmr.msrb.gmra.mxu3 %vm416_vm10, %v313_v29  ;;  %v317_v30 = vpop.permute.xlu1 %316 }
 0x1e1   :  { %v324_v7 = vsel %vm46_vm7, %v652_v25, %v317_v30  ;;  %v323_v9 = vsel %vm46_vm7, %v317_v30, %v653_v24 }
 0x1e3   :  { %v329_v31 = vpop.permute.xlu0 %328 }
 0x1e4   :  { %v336_v32 = vsel %vm59_vm8, %v647_v15, %v329_v31  ;;  %v335_v33 = vsel %vm59_vm8, %v329_v31, %v648_v19 }
 0x1e5   :  { %433 = vmatpush.msrb.mxu0 %v336_v32  ;;  %453 = vmatpush.msrb.mxu1 %v335_v33 }
 0x1e7   :  { %434 = vmatpush.msrb.mxu0 %v324_v7  ;;  %454 = vmatpush.msrb.mxu1 %v323_v9 }
 0x1e9   :  { %435 = vmatpush.msrb.mxu0 %v309_v2  ;;  %455 = vmatpush.msrb.mxu1 %v873_v8 }
 0x1ea   :  { %518 = vmatmul.msk.f32.vlgmr.msrb.gmra.mxu0 %vm416_vm10, %v313_v29  ;;  %519 = vmatmul.msk.f32.vlgmr.msrb.gmra.mxu1 %vm416_vm10, %v313_v29 }
 0x263   :  { %v477_v34 = vpop.f32.mrf.mxu2  ;;  %v497_v35 = vpop.f32.mrf.mxu3 }
 0x264   :  { %v478_v36 = vadd.f32 %v477_v34, %v414_v12  ;;  %v498_v37 = vadd.f32 %v497_v35, %v414_v12 }
 0x266   :  { %522 = vst [vmem:[%s1021_s5 + $0x10] sm:$0xff] %v478_v36 }
 0x267   :  { %523 = vst [vmem:[%s1021_s5 + $0x18] sm:$0xff] %v498_v37  ;;  %v437_v11 = vpop.f32.mrf.mxu0  ;;  %v457_v63 = vpop.f32.mrf.mxu1 }
 0x268   :  { %v438_v2 = vadd.f32 %v437_v11, %v414_v12  ;;  %v458_v8 = vadd.f32 %v457_v63, %v414_v12 }
 0x26a   :  { %500 = vst [vmem:[%s1021_s5] sm:$0xff] %v438_v2 }
 0x26b   :  { %501 = vst [vmem:[%s1021_s5 + $0x8] sm:$0xff] %v458_v8 }

</bundles_post_ra>
